<compile_context>
chip_gen: v5e
topology: v5e:2x2
jax: 0.10.0
libtpu: 0.0.40
codegen_flags: <defaults>
</compile_context>

<pallas_src>
import functools

import jax
import jax.numpy as jnp
from jax.experimental import pallas as pl
from jax.experimental.pallas import tpu as pltpu


def _sigmoid(x):
    return 1.0 / (1.0 + jnp.exp(-x))


def _cbam_kernel(x_ref, w1t_ref, w2t_ref, wsp_ref, o_ref, sum_acc, max_acc,
                 *, hw, thw, lane_w, bt):
    """Fused CBAM forward (streaming reduction + tiny FC/gate epilogue).

    x_ref   : (Bt, C, THW)     current tile of the input feature map (native dtype)
    w1t_ref : (C, Cr)          fc conv1x1 #1 weight, pre-transposed (Cr = C // rate)
    w2t_ref : (Cr, C)          fc conv1x1 #2 weight, pre-transposed
    wsp_ref : (2,)      SMEM   center taps of the 7x7 spatial conv [mean_tap, max_tap]
    o_ref   : (Bt, C)          output = channel gate * spatial gate
    sum_acc : (Bt, C, lane_w)  f32 VMEM scratch, lane-wide running spatial sum
    max_acc : (Bt, C, lane_w)  f32 VMEM scratch, lane-wide running spatial max
    """
    k = pl.program_id(1)
    nk = pl.num_programs(1)
    nchunks = thw // lane_w

    # ---- init accumulators at the start of each batch block's HW sweep ----
    @pl.when(k == 0)
    def _():
        sum_acc[...] = jnp.zeros_like(sum_acc)
        max_acc[...] = jnp.full_like(max_acc, -jnp.inf)

    # ---- streaming avg/max pooling over the spatial (lane) axis.  Accumulate into
    #      lane-wide partials so the inner loop is pure VPU (no per-tile XLU reduce). --
    def accumulate(masked):
        xt = x_ref[...].astype(jnp.float32)                      # (Bt, C, THW)
        s = sum_acc[...]
        m = max_acc[...]
        for i in range(nchunks):                                 # static, unrolled
            chunk = xt[:, :, i * lane_w:(i + 1) * lane_w]        # (Bt, C, lane_w)
            if masked:
                lane = jax.lax.broadcasted_iota(jnp.int32, chunk.shape, dimension=2)
                valid = (k * thw + i * lane_w + lane) < hw
                s = s + jnp.where(valid, chunk, 0.0)
                m = jnp.maximum(m, jnp.where(valid, chunk, -jnp.inf))
            else:
                s = s + chunk
                m = jnp.maximum(m, chunk)
        sum_acc[...] = s
        max_acc[...] = m

    if hw % thw != 0:
        # Only the last HW tile is partial; mask it there, stay unmasked elsewhere.
        @pl.when(k < nk - 1)
        def _():
            accumulate(masked=False)

        @pl.when(k == nk - 1)
        def _():
            accumulate(masked=True)
    else:
        accumulate(masked=False)

    # ---- epilogue: channel attention FC + spatial gate on the (B,C,1,1) gate ----
    @pl.when(k == nk - 1)
    def _():
        avg = jnp.sum(sum_acc[...], axis=-1) * (1.0 / float(hw))   # (Bt, C) true mean
        mx = jnp.max(max_acc[...], axis=-1)                        # (Bt, C)

        w1 = w1t_ref[...].astype(jnp.float32)                      # (C, Cr)
        w2 = w2t_ref[...].astype(jnp.float32)                      # (Cr, C)

        # Fused FC for both pooled branches: one matmul pair on (2*Bt, C).
        stacked = jnp.concatenate([avg, mx], axis=0)               # (2*Bt, C)
        h = jnp.dot(stacked, w1, preferred_element_type=jnp.float32)
        h = jnp.maximum(h, 0.0)                                    # ReLU
        fc = jnp.dot(h, w2, preferred_element_type=jnp.float32)    # (2*Bt, C)
        ca = _sigmoid(fc[:bt] + fc[bt:])                           # (Bt, C) channel gate

        # Spatial attention on the (B, C, 1, 1) channel gate: mean/max over channels,
        # 7x7 conv with zero padding on a 1x1 map == center-tap dot product.
        ch_mean = jnp.mean(ca, axis=-1, keepdims=True)             # (Bt, 1)
        ch_max = jnp.max(ca, axis=-1, keepdims=True)               # (Bt, 1)
        conv = ch_mean * wsp_ref[0] + ch_max * wsp_ref[1]          # (Bt, 1)
        sa = _sigmoid(conv)                                        # (Bt, 1) spatial gate

        o_ref[...] = (ca * sa).astype(o_ref.dtype)


def cbam_forward(x, w_fc1, w_fc2, w_spatial):
    """x: (B, C, H, W).  Returns (B, C, 1, 1), same dtype as x (matches PyTorch CBAM)."""
    B, C, H, W = x.shape
    Cr = w_fc1.shape[0]
    assert w_fc1.shape == (Cr, C, 1, 1)
    assert w_fc2.shape == (C, Cr, 1, 1)
    assert w_spatial.shape[:2] == (1, 2)
    HW = H * W

    # Free metadata reshape only — input keeps its native dtype (bf16 stays bf16).
    x_flat = x.reshape(B, C, HW)

    # 1x1 convs == matmuls; pre-transpose the tiny weights (parameter glue).
    w1t = w_fc1.reshape(Cr, C).T                              # (C, Cr)
    w2t = w_fc2.reshape(C, Cr).T                              # (Cr, C)
    # Only the center taps of the 7x7 (or 3x3) kernel touch the 1x1 input.
    ks = w_spatial.shape[-1]
    wsp = w_spatial[0, :, ks // 2, ks // 2].astype(jnp.float32)   # (2,) -> SMEM scalars

    # ---- tile selection: ~4 MiB per x buffer so 2x buffers fit comfortably on v7x ----
    itemsize = jnp.dtype(x.dtype).itemsize
    bt = B if B <= 8 else 8                                   # output sublane rule safe

    def tile_bytes(t):
        return bt * C * t * itemsize

    target = 4 * 1024 * 1024
    if tile_bytes(HW) <= target or HW <= 128:
        thw = HW                                              # full extent: always legal
    else:
        thw = 128                                             # lane-multiple tiles
        while thw * 2 <= HW and thw * 2 <= 8192 and tile_bytes(thw * 2) <= target:
            thw *= 2

    # Lane-wide accumulator width: 128 when tiles are lane-multiples, else the single
    # full-extent tile (nk == 1 in that case, so no masking is ever needed).
    lane_w = 128 if thw % 128 == 0 else thw

    nb = pl.cdiv(B, bt)
    nk = pl.cdiv(HW, thw)

    tb = tile_bytes(thw)
    acc_bytes = 2 * bt * C * lane_w * 4
    wts_bytes = 4 * C * Cr * jnp.dtype(w1t.dtype).itemsize
    out_bytes = 2 * bt * C * itemsize
    vmem_need = 2 * tb + acc_bytes + wts_bytes + out_bytes
    vmem_limit = int(min(max(vmem_need + (8 << 20), 16 << 20), 48 << 20))

    cost = pl.CostEstimate(
        flops=int(2 * B * C * HW + 8 * B * C * max(Cr, 1) + 8 * B * C),
        transcendentals=int(B * C + B),
        bytes_accessed=int(B * C * HW * itemsize + B * C * itemsize
                           + (2 * C * Cr + 2) * 4),
    )

    kernel = functools.partial(_cbam_kernel, hw=HW, thw=thw, lane_w=lane_w, bt=bt)

    out = pl.pallas_call(
        kernel,
        out_shape=jax.ShapeDtypeStruct((B, C), x.dtype),
        grid=(nb, nk),
        in_specs=[
            pl.BlockSpec((bt, C, thw), lambda b, k: (b, 0, k)),
            pl.BlockSpec((C, Cr), lambda b, k: (0, 0)),
            pl.BlockSpec((Cr, C), lambda b, k: (0, 0)),
            pl.BlockSpec(memory_space=pltpu.MemorySpace.SMEM),
        ],
        out_specs=pl.BlockSpec((bt, C), lambda b, k: (b, 0)),
        scratch_shapes=[
            pltpu.VMEM((bt, C, lane_w), jnp.float32),   # lane-wide running sum
            pltpu.VMEM((bt, C, lane_w), jnp.float32),   # lane-wide running max
        ],
        compiler_params=pltpu.CompilerParams(
            dimension_semantics=("parallel", "arbitrary"),
            vmem_limit_bytes=vmem_limit,
        ),
        cost_estimate=cost,
    )(x_flat, w1t, w2t, wsp)

    return out.reshape(B, C, 1, 1)


def _reference(x, w_fc1, w_fc2, w_spatial):
    """Pure-JAX reference mirroring the PyTorch code, for a sanity check."""
    B, C, H, W = x.shape
    Cr = w_fc1.shape[0]
    w1 = w_fc1.reshape(Cr, C)
    w2 = w_fc2.reshape(C, Cr)

    def fc(v):  # v: (B, C)
        return jnp.maximum(v @ w1.T, 0.0) @ w2.T

    avg = jnp.mean(x, axis=(2, 3))
    mx = jnp.max(x, axis=(2, 3))
    ca = jax.nn.sigmoid(fc(avg) + fc(mx))            # (B, C)
    ca4 = ca[:, :, None, None]                       # (B, C, 1, 1)

    ch_mean = jnp.mean(ca4, axis=1, keepdims=True)   # (B, 1, 1, 1)
    ch_max = jnp.max(ca4, axis=1, keepdims=True)     # (B, 1, 1, 1)
    cat = jnp.concatenate([ch_mean, ch_max], axis=1) # (B, 2, 1, 1)
    ks = w_spatial.shape[-1]
    conv = jax.lax.conv_general_dilated(
        cat, w_spatial, window_strides=(1, 1), padding=[(ks // 2, ks // 2)] * 2,
        dimension_numbers=("NCHW", "OIHW", "NCHW"))
    return ca4 * jax.nn.sigmoid(conv)                # (B, C, 1, 1)


if __name__ == "__main__":
    B, C, H, W = 2, 4, 16, 16
    rate = 4
    Cr = C // rate
    ksize = 7

    key = jax.random.PRNGKey(0)
    kx, k1, k2, k3 = jax.random.split(key, 4)
    x = jax.random.normal(kx, (B, C, H, W), dtype=jnp.float32)
    w_fc1 = jax.random.normal(k1, (Cr, C, 1, 1), dtype=jnp.float32) * 0.5
    w_fc2 = jax.random.normal(k2, (C, Cr, 1, 1), dtype=jnp.float32) * 0.5
    w_spatial = jax.random.normal(k3, (1, 2, ksize, ksize), dtype=jnp.float32) * 0.2

    out = cbam_forward(x, w_fc1, w_fc2, w_spatial)
    jax.block_until_ready(out)

    ref = _reference(x, w_fc1, w_fc2, w_spatial)
    assert out.shape == (B, C, 1, 1)
    assert jnp.allclose(out, ref, atol=1e-5, rtol=1e-5)

    print("KERNEL_OK")
</pallas_src>

<mosaic_0001>
module attributes {stable_mosaic.version = 11 : i64} {
  func.func @_cbam_kernel(%arg0: i32, %arg1: i32, %arg2: memref<2x4x256xf32, #tpu.memory_space<vmem>>, %arg3: memref<4x1xf32, #tpu.memory_space<vmem>>, %arg4: memref<1x4xf32, #tpu.memory_space<vmem>>, %arg5: memref<2xf32, #tpu.memory_space<smem>>, %arg6: memref<2x4xf32, #tpu.memory_space<vmem>>, %arg7: memref<2x4x128xf32, #tpu.memory_space<vmem>>, %arg8: memref<2x4x128xf32, #tpu.memory_space<vmem>>) attributes {dimension_semantics = [#tpu.dimension_semantics<parallel>, #tpu.dimension_semantics<arbitrary>], iteration_bounds = array<i64: 1, 1>, scalar_prefetch = 0 : i64, scratch_operands = 2 : i64, tpu.core_type = #tpu.core_type<tc>, window_params = [{transform_indices = @transform_0, window_bounds = array<i64: 2, 4, 256>}, {pipeline_mode = #tpu.pipeline_mode<synchronous>, transform_indices = @transform_1, window_bounds = array<i64: 4, 1>}, {pipeline_mode = #tpu.pipeline_mode<synchronous>, transform_indices = @transform_2, window_bounds = array<i64: 1, 4>}, {transform_indices = @transform_3, window_bounds = array<i64: 2>}, {transform_indices = @transform_4, window_bounds = array<i64: 2, 4>}]} {
    %c0_i32 = arith.constant 0 : i32
    %0 = arith.cmpi eq, %arg1, %c0_i32 : i32
    %1 = arith.extui %0 : i1 to i32
    %c0_i32_0 = arith.constant 0 : i32
    %2 = arith.cmpi ne, %1, %c0_i32_0 : i32
    scf.if %2 {
      %cst = arith.constant 0.000000e+00 : f32
      %17 = vector.broadcast %cst : f32 to vector<2x4x128xf32>
      %c0_17 = arith.constant 0 : index
      %c0_18 = arith.constant 0 : index
      %c0_19 = arith.constant 0 : index
      %18 = vector.load %arg7[%c0_17, %c0_18, %c0_19] : memref<2x4x128xf32, #tpu.memory_space<vmem>>, vector<2x4x128xf32>
      tpu.vector_store %arg7[%c0_17, %c0_18, %c0_19], %17 {strides = array<i32>} : memref<2x4x128xf32, #tpu.memory_space<vmem>>, vector<2x4x128xf32>,
      %cst_20 = arith.constant 0xFF800000 : f32
      %19 = vector.broadcast %cst_20 : f32 to vector<2x4x128xf32>
      %c0_21 = arith.constant 0 : index
      %c0_22 = arith.constant 0 : index
      %c0_23 = arith.constant 0 : index
      %20 = vector.load %arg8[%c0_21, %c0_22, %c0_23] : memref<2x4x128xf32, #tpu.memory_space<vmem>>, vector<2x4x128xf32>
      tpu.vector_store %arg8[%c0_21, %c0_22, %c0_23], %19 {strides = array<i32>} : memref<2x4x128xf32, #tpu.memory_space<vmem>>, vector<2x4x128xf32>,
    } else {
    }
    %c0 = arith.constant 0 : index
    %c0_1 = arith.constant 0 : index
    %c0_2 = arith.constant 0 : index
    %3 = vector.load %arg2[%c0, %c0_1, %c0_2] : memref<2x4x256xf32, #tpu.memory_space<vmem>>, vector<2x4x256xf32>
    %c0_3 = arith.constant 0 : index
    %c0_4 = arith.constant 0 : index
    %c0_5 = arith.constant 0 : index
    %4 = vector.load %arg7[%c0_3, %c0_4, %c0_5] : memref<2x4x128xf32, #tpu.memory_space<vmem>>, vector<2x4x128xf32>
    %c0_6 = arith.constant 0 : index
    %c0_7 = arith.constant 0 : index
    %c0_8 = arith.constant 0 : index
    %5 = vector.load %arg8[%c0_6, %c0_7, %c0_8] : memref<2x4x128xf32, #tpu.memory_space<vmem>>, vector<2x4x128xf32>
    %6 = vector.extract_strided_slice %3 {offsets = [0, 0, 0], sizes = [2, 4, 128], strides = [1, 1, 1]} : vector<2x4x256xf32> to vector<2x4x128xf32>
    %7 = arith.addf %4, %6 : vector<2x4x128xf32>
    %8 = arith.maximumf %5, %6 : vector<2x4x128xf32>
    %9 = vector.extract_strided_slice %3 {offsets = [0, 0, 128], sizes = [2, 4, 128], strides = [1, 1, 1]} : vector<2x4x256xf32> to vector<2x4x128xf32>
    %10 = arith.addf %7, %9 : vector<2x4x128xf32>
    %11 = arith.maximumf %8, %9 : vector<2x4x128xf32>
    %c0_9 = arith.constant 0 : index
    %c0_10 = arith.constant 0 : index
    %c0_11 = arith.constant 0 : index
    %12 = vector.load %arg7[%c0_9, %c0_10, %c0_11] : memref<2x4x128xf32, #tpu.memory_space<vmem>>, vector<2x4x128xf32>
    tpu.vector_store %arg7[%c0_9, %c0_10, %c0_11], %10 {strides = array<i32>} : memref<2x4x128xf32, #tpu.memory_space<vmem>>, vector<2x4x128xf32>,
    %c0_12 = arith.constant 0 : index
    %c0_13 = arith.constant 0 : index
    %c0_14 = arith.constant 0 : index
    %13 = vector.load %arg8[%c0_12, %c0_13, %c0_14] : memref<2x4x128xf32, #tpu.memory_space<vmem>>, vector<2x4x128xf32>
    tpu.vector_store %arg8[%c0_12, %c0_13, %c0_14], %11 {strides = array<i32>} : memref<2x4x128xf32, #tpu.memory_space<vmem>>, vector<2x4x128xf32>,
    %c0_i32_15 = arith.constant 0 : i32
    %14 = arith.cmpi eq, %arg1, %c0_i32_15 : i32
    %15 = arith.extui %14 : i1 to i32
    %c0_i32_16 = arith.constant 0 : i32
    %16 = arith.cmpi ne, %15, %c0_i32_16 : i32
    scf.if %16 {
      %c0_17 = arith.constant 0 : index
      %c0_18 = arith.constant 0 : index
      %c0_19 = arith.constant 0 : index
      %17 = vector.load %arg7[%c0_17, %c0_18, %c0_19] : memref<2x4x128xf32, #tpu.memory_space<vmem>>, vector<2x4x128xf32>
      %cst = arith.constant dense<0.000000e+00> : vector<2x4xf32>
      %18 = vector.multi_reduction <add>, %17, %cst [2] : vector<2x4x128xf32> to vector<2x4xf32>
      %cst_20 = arith.constant 3.906250e-03 : f32
      %19 = vector.broadcast %cst_20 : f32 to vector<2x4xf32>
      %20 = arith.mulf %18, %19 : vector<2x4xf32>
      %c0_21 = arith.constant 0 : index
      %c0_22 = arith.constant 0 : index
      %c0_23 = arith.constant 0 : index
      %21 = vector.load %arg8[%c0_21, %c0_22, %c0_23] : memref<2x4x128xf32, #tpu.memory_space<vmem>>, vector<2x4x128xf32>
      %cst_24 = arith.constant dense<0xFF800000> : vector<2x4xf32>
      %22 = vector.multi_reduction <maximumf>, %21, %cst_24 [2] : vector<2x4x128xf32> to vector<2x4xf32>
      %c0_25 = arith.constant 0 : index
      %c0_26 = arith.constant 0 : index
      %23 = vector.load %arg3[%c0_25, %c0_26] : memref<4x1xf32, #tpu.memory_space<vmem>>, vector<4x1xf32>
      %c0_27 = arith.constant 0 : index
      %c0_28 = arith.constant 0 : index
      %24 = vector.load %arg4[%c0_27, %c0_28] : memref<1x4xf32, #tpu.memory_space<vmem>>, vector<1x4xf32>
      %25 = tpu.concatenate %20, %22 in 0 : vector<2x4xf32>, vector<2x4xf32> -> vector<4x4xf32>
      %cst_29 = arith.constant dense<0.000000e+00> : vector<4x1xf32>
      %26 = tpu.matmul %25, %23, %cst_29 {dimension_numbers = #tpu.dot_dimension_numbers<[1], [0], [0], [1], [0, 0, 1, 1], [], []>} : vector<4x4xf32>, vector<4x1xf32>, vector<4x1xf32> -> vector<4x1xf32>
      %cst_30 = arith.constant 0.000000e+00 : f32
      %27 = vector.broadcast %cst_30 : f32 to vector<4x1xf32>
      %28 = arith.maximumf %26, %27 : vector<4x1xf32>
      %cst_31 = arith.constant dense<0.000000e+00> : vector<4x4xf32>
      %29 = tpu.matmul %28, %24, %cst_31 {dimension_numbers = #tpu.dot_dimension_numbers<[1], [0], [0], [1], [0, 0, 1, 1], [], []>} : vector<4x1xf32>, vector<1x4xf32>, vector<4x4xf32> -> vector<4x4xf32>
      %30 = vector.extract_strided_slice %29 {offsets = [0, 0], sizes = [2, 4], strides = [1, 1]} : vector<4x4xf32> to vector<2x4xf32>
      %31 = vector.extract_strided_slice %29 {offsets = [2, 0], sizes = [2, 4], strides = [1, 1]} : vector<4x4xf32> to vector<2x4xf32>
      %32 = arith.addf %30, %31 : vector<2x4xf32>
      %cst_32 = arith.constant 0.000000e+00 : f32
      %33 = vector.broadcast %cst_32 : f32 to vector<2x4xf32>
      %34 = arith.subf %33, %32 : vector<2x4xf32>
      %35 = math.exp %34 : vector<2x4xf32>
      %cst_33 = arith.constant 1.000000e+00 : f32
      %36 = vector.broadcast %cst_33 : f32 to vector<2x4xf32>
      %37 = arith.addf %36, %35 : vector<2x4xf32>
      %cst_34 = arith.constant 1.000000e+00 : f32
      %38 = vector.broadcast %cst_34 : f32 to vector<2x4xf32>
      %39 = arith.divf %38, %37 : vector<2x4xf32>
      %cst_35 = arith.constant dense<0.000000e+00> : vector<2xf32>
      %40 = vector.multi_reduction <add>, %39, %cst_35 [1] : vector<2x4xf32> to vector<2xf32>
      %41 = vector.shape_cast %40 : vector<2xf32> to vector<2x1xf32>
      %cst_36 = arith.constant 4.000000e+00 : f32
      %42 = vector.broadcast %cst_36 : f32 to vector<2x1xf32>
      %43 = arith.divf %41, %42 : vector<2x1xf32>
      %cst_37 = arith.constant dense<0xFF800000> : vector<2xf32>
      %44 = vector.multi_reduction <maximumf>, %39, %cst_37 [1] : vector<2x4xf32> to vector<2xf32>
      %45 = vector.shape_cast %44 : vector<2xf32> to vector<2x1xf32>
      %c0_38 = arith.constant 0 : index
      %46 = memref.load %arg5[%c0_38] : memref<2xf32, #tpu.memory_space<smem>>
      %47 = vector.broadcast %46 : f32 to vector<2x1xf32>
      %48 = arith.mulf %43, %47 : vector<2x1xf32>
      %c1 = arith.constant 1 : index
      %49 = memref.load %arg5[%c1] : memref<2xf32, #tpu.memory_space<smem>>
      %50 = vector.broadcast %49 : f32 to vector<2x1xf32>
      %51 = arith.mulf %45, %50 : vector<2x1xf32>
      %52 = arith.addf %48, %51 : vector<2x1xf32>
      %cst_39 = arith.constant 0.000000e+00 : f32
      %53 = vector.broadcast %cst_39 : f32 to vector<2x1xf32>
      %54 = arith.subf %53, %52 : vector<2x1xf32>
      %55 = math.exp %54 : vector<2x1xf32>
      %cst_40 = arith.constant 1.000000e+00 : f32
      %56 = vector.broadcast %cst_40 : f32 to vector<2x1xf32>
      %57 = arith.addf %56, %55 : vector<2x1xf32>
      %cst_41 = arith.constant 1.000000e+00 : f32
      %58 = vector.broadcast %cst_41 : f32 to vector<2x1xf32>
      %59 = arith.divf %58, %57 : vector<2x1xf32>
      %60 = vector.broadcast %59 : vector<2x1xf32> to vector<2x4xf32>
      %61 = arith.mulf %39, %60 : vector<2x4xf32>
      %c0_42 = arith.constant 0 : index
      %c0_43 = arith.constant 0 : index
      %62 = vector.load %arg6[%c0_42, %c0_43] : memref<2x4xf32, #tpu.memory_space<vmem>>, vector<2x4xf32>
      tpu.vector_store %arg6[%c0_42, %c0_43], %61 {strides = array<i32>} : memref<2x4xf32, #tpu.memory_space<vmem>>, vector<2x4xf32>,
    } else {
    }
    return
  }
  func.func @transform_0(%arg0: i32, %arg1: i32) -> (i32, i32, i32) {
    %c0_i32 = arith.constant 0 : i32
    %c0_i32_0 = arith.constant 0 : i32
    return %arg0, %c0_i32, %arg1 : i32, i32, i32
  }
  func.func @transform_1(%arg0: i32, %arg1: i32) -> (i32, i32) {
    %c0_i32 = arith.constant 0 : i32
    %c0_i32_0 = arith.constant 0 : i32
    %c0_i32_1 = arith.constant 0 : i32
    return %c0_i32, %c0_i32_0 : i32, i32
  }
  func.func @transform_2(%arg0: i32, %arg1: i32) -> (i32, i32) {
    %c0_i32 = arith.constant 0 : i32
    %c0_i32_0 = arith.constant 0 : i32
    %c0_i32_1 = arith.constant 0 : i32
    return %c0_i32, %c0_i32_0 : i32, i32
  }
  func.func @transform_3(%arg0: i32, %arg1: i32) -> i32 {
    %c0_i32 = arith.constant 0 : i32
    %c0_i32_0 = arith.constant 0 : i32
    return %c0_i32 : i32
  }
  func.func @transform_4(%arg0: i32, %arg1: i32) -> (i32, i32) {
    %c0_i32 = arith.constant 0 : i32
    %c0_i32_0 = arith.constant 0 : i32
    return %arg0, %c0_i32 : i32, i32
  }
}

</mosaic_0001>

<bundles_post_ra>
// kernel: tpu_custom_call.1
= control target key start
LH: loop header
LB: loop body
LE: loop exit
PB: predicated region body
PF: predicated region fallthrough
CT: control target
= control target key end

     0   :  { %9 = vsyncpa [#allocation5], 0  ;;  %s416_s0 = inlined_call_operand.hbm [shape: f32[2,4,256], index: 0, kind: input, shape index: {}]   ;;  %s417_s1 = inlined_call_operand.vmem [shape: f32[4,1], index: 1, kind: input, shape index: {}]   ;;  %s418_s2 = inlined_call_operand.vmem [shape: f32[1,4], index: 2, kind: input, shape index: {}]   ;;  %s419_s3 = inlined_call_operand.vmem [shape: f32[2], index: 3, kind: input, shape index: {}]   ;;  %s420_s4 = inlined_call_operand.hbm [shape: f32[2,4], index: 4, kind: output, shape index: {}]  }
   0x1   :  { %10 = vsyncpa [#allocation7], 0 }
   0x2   :  { %11 = vsyncpa [#allocation6], 0  ;;  %s16_s17 = sshll.u32 %s416_s0, 4  ;;  %s360_s18 = smov [#allocation4]   ;;  %s17_s17 = int_to_ptr.hbm [resolvable:$true] %s16_s17 }
   0x3   :  { %s18_s19 = sshll.u32 %s360_s18, 4  ;;  %s34_s22 = sshll.u32 %s419_s3, 4  ;;  %s19_s19 = int_to_ptr.vmem [resolvable:$true] %s18_s19  ;;  %s35_s22 = int_to_ptr.vmem [resolvable:$true] %s34_s22 }
   0x4   :  { %s361_s23 = smov 128   ;;  %s362_s24 = smov 8  }
   0x5   :  { %24 = dma.hbm_to_vmem [thread:$0]  %s17_s17, 256, %s19_s19, [#allocation5], %s361_s23, %s361_s23, %s362_s24  }
   0x6   :  { %s363_s25 = smov [#allocation8]  }
   0x7   :  { %37 = dma.vmem_to_smem %s35_s22, 16, %s363_s25, [#allocation7]  }
   0x8   :  { %354 = dma.done.wait [#allocation5], 256  }
   0x9   :  { %355 = vsyncadd [#allocation5], 4294967040 }
   0xa   :  { %356 = dma.done.wait [#allocation7], 16  }
   0xb   :  { %357 = vsyncadd [#allocation7], 4294967280 }
   0xc   :  { %46 = sfence }
   0xd   :  { %v55_v0 = vld [vmem:[#allocation4] sm:$0xff]  ;;  %v364_v1 = vmov 0.0   ;;  %v56_v2 = vld [vmem:[#allocation4 + $0x8] sm:$0xff]  ;;  %v365_v3 = vmov -inf   ;;  %vm94_vm0 = vcmask 1043456   ;;  %v115_v31 = vlaneseq  ;;  %s275_s27 = sld [smem:[#allocation8 + $0x1]] }
   0xe   :  { %51 = vst [vmem:[#allocation2] sm:$0xf] %v364_v1  ;;  %v111_v28 = vld [vmem:[%s417_s1] sm:$0xf]  ;;  %vm119_vm1 = vcmask 1041409   ;;  %vm126_vm2 = vcmask 1043459  }
   0xf   :  { %67 = vst [vmem:[#allocation1] ss:$2 sm:$0xff] %v55_v0  ;;  %271 = vmatpush.msk.msra.mxu0 %vm94_vm0, %v111_v28  ;;  %v116_v34 = vand.u32 127, %v115_v31  ;;  %vm129_vm3 = vcmask 1041408   ;;  %vm131_vm4 = vcmask 31744   ;;  %vm163_vm5 = vcmask 1040384  }
  0x10   :  { %52 = vst [vmem:[#allocation2 + $0x4] sm:$0xf] %v364_v1  ;;  %v112_v44 = vld [vmem:[%s418_s2] sm:$0x1]  ;;  %vm159_vm6 = vcmask 7168   ;;  %vm210_vm10 = vcmask 25600  }
  0x11   :  { %53 = vst [vmem:[#allocation3] sm:$0xf] %v365_v3  ;;  %273 = vmatpush.msk.msra.mxu1 %vm163_vm5, %v112_v44  ;;  %s225_s2 = sld [smem:[#allocation8]]  ;;  %s367_s28 = smov [#allocation9]  }
  0x12   :  { %54 = vst [vmem:[#allocation3 + $0x4] sm:$0xf] %v365_v3  ;;  %s258_s29 = sshll.u32 %s367_s28, 4  ;;  %s260_s6 = sshll.u32 %s420_s4, 4  ;;  %s259_s29 = int_to_ptr.vmem [resolvable:$true] %s258_s29  ;;  %s261_s6 = int_to_ptr.hbm [resolvable:$true] %s260_s6 }
  0x13   :  { %70 = vst [vmem:[#allocation1 + $0x10] ss:$2 sm:$0xff] %v56_v2 }
  0x15   :  { %v57_v4 = vld [vmem:[#allocation2] sm:$0xf] }
  0x16   :  { %v61_v5 = vadd.f32 %v57_v4, %v55_v0  ;;  %v68_v6 = vld.sshfl [vmem:[#allocation1 + $0x8] sm:$0xff pattern:$0x75316420] }
  0x17   :  { %76 = vst [vmem:[#allocation1] ss:$2 sm:$0xff] %v55_v0  ;;  %v58_v7 = vld [vmem:[#allocation2 + $0x4] sm:$0xf] }
  0x18   :  { %v74_v8 = vadd.f32 %v68_v6, %v61_v5  ;;  %v59_v9 = vld [vmem:[#allocation3] sm:$0xf]  ;;  %v62_v10 = vadd.f32 %v58_v7, %v56_v2 }
  0x19   :  { %v63_v12 = vmax.f32 %v59_v9, %v55_v0  ;;  %v60_v14 = vld [vmem:[#allocation3 + $0x4] sm:$0xf] }
  0x1a   :  { %85 = vst [vmem:[#allocation2] sm:$0xf] %v74_v8  ;;  %v71_v11 = vld.sshfl [vmem:[#allocation1 + $0x18] sm:$0xff pattern:$0x75316420]  ;;  %v64_v17 = vmax.f32 %v60_v14, %v56_v2 }
  0x1b   :  { %v75_v13 = vadd.f32 %v71_v11, %v62_v10  ;;  %79 = vst [vmem:[#allocation1 + $0x10] ss:$2 sm:$0xff] %v56_v2  ;;  %v366_v2 = vmov 4.0   ;;  %v226_v11 = vstv %s225_s2 }
  0x1d   :  { %86 = vst [vmem:[#allocation2 + $0x4] sm:$0xf] %v75_v13 }
  0x1e   :  { %v77_v15 = vld.sshfl [vmem:[#allocation1 + $0x8] sm:$0xff pattern:$0x75316420] }
  0x1f   :  { %v83_v16 = vmax.f32 %v63_v12, %v77_v15  ;;  %v229_v12 = vstv %s275_s27 }
  0x21   :  { %v92_v18 = vld [vmem:[#allocation2] sm:$0xf]  ;;  %87 = vst [vmem:[#allocation3] sm:$0xf] %v83_v16 }
  0x22   :  { %v95_v19 = vsel %vm94_vm0, %v92_v18, 0.0  ;;  %v80_v20 = vld.sshfl [vmem:[#allocation1 + $0x18] sm:$0xff pattern:$0x75316420] }
  0x23   :  { %96 = vadd.xlane.f32.xlu0 %v95_v19  ;;  %v84_v21 = vmax.f32 %v64_v17, %v80_v20 }
  0x24   :  { %v93_v22 = vld [vmem:[#allocation2 + $0x4] sm:$0xf] }
  0x25   :  { %88 = vst [vmem:[#allocation3 + $0x4] sm:$0xf] %v84_v21  ;;  %v98_v24 = vsel %vm94_vm0, %v93_v22, 0.0 }
  0x28   :  { %v103_v23 = vld [vmem:[#allocation3] sm:$0xf] }
  0x29   :  { %v105_v25 = vsel %vm94_vm0, %v103_v23, -inf }
  0x2a   :  { %106 = vmax.xlane.f32.xlu1 %v105_v25 }
  0x2b   :  { %99 = vadd.xlane.f32.xlu0 %v98_v24 }
  0x2c   :  { %v104_v26 = vld [vmem:[#allocation3 + $0x4] sm:$0xf] }
  0x2d   :  { %v108_v27 = vsel %vm94_vm0, %v104_v26, -inf }
  0x32   :  { %109 = vmax.xlane.f32.xlu1 %v108_v27 }
  0x96   :  { %v97_v29 = vpop.xlane.xlu0 %96 }
  0x97   :  { %v101_v35 = vmul.f32 0.00390625, %v97_v29 }
  0x99   :  { %v117_v38 = vperm.slane %v101_v35, %v116_v34 }
  0x9d   :  { %v107_v30 = vpop.xlane.xlu1 %106 }
  0x9e   :  { %v100_v32 = vpop.xlane.xlu0 %99  ;;  %v124_v39 = vperm.slane %v107_v30, %v116_v34 }
  0x9f   :  { %v102_v33 = vmul.f32 0.00390625, %v100_v32 }
  0xa1   :  { %v118_v36 = vperm.slane %v102_v33, %v116_v34 }
  0xa3   :  { %v120_v41 = vsel %vm119_vm1, %v118_v36, %v117_v38 }
  0xa5   :  { %v110_v37 = vpop.xlane.xlu1 %109 }
  0xa6   :  { %v125_v40 = vperm.slane %v110_v37, %v116_v34 }
  0xa8   :  { %v127_v42 = vsel %vm126_vm2, %v125_v40, %v124_v39 }
  0xa9   :  { %v130_v43 = vsel %vm129_vm3, %v120_v41, %v127_v42 }
  0xaa   :  { %272 = vmatmul.msk.f32.vlgmr.msra.gmra.mxu0 %vm131_vm4, %v130_v43 }
 0x127   :  { %v155_v45 = vpop.f32.mrf.mxu0 }
 0x128   :  { %v158_v46 = vmax.f32 %v155_v45, 0.0 }
 0x12a   :  { %274 = vmatmul.msk.f32.vlgmr.msra.gmra.mxu1 %vm159_vm6, %v158_v46 }
 0x1a7   :  { %v184_v47 = vpop.f32.mrf.mxu1 }
 0x1a8   :  { %v188_v48 = vrot.slane %v184_v47, 2 }
 0x1aa   :  { %v190_v49 = vadd.f32 %v188_v48, %v184_v47 }
 0x1ac   :  { %v191_v50 = vsub.f32 0.0, %v190_v49 }
 0x1ae   :  { %v192_v51 = vmul.f32 1.442695, %v191_v50 }
 0x1b0   :  { %284 = vpow2.f32 %v192_v51 }
 0x1b6   :  { %v285_v52 = vpop.eup %284 }
 0x1b7   :  { %v194_v53 = vadd.f32 1.0, %v285_v52 }
 0x1b9   :  { %286 = vrcp.f32 %v194_v53  ;;  %v206_v57 = vand.u32 2147483648, %v194_v53  ;;  %v204_v59 = vand.u32 2147483647, %v194_v53  ;;  %vm200_vm8 = vweird.f32 %v194_v53 }
 0x1ba   :  { %288 = vrcp.f32 %v366_v2 }
 0x1bb   :  { %v207_v61 = vor.u32 1.1754944e-38, %v206_v57  ;;  %vm205_vm11 = vcmp.eq.f32.partialorder %v204_v59, 8.507059e+37 }
 0x1bf   :  { %v287_v54 = vpop.eup %286 }
 0x1c0   :  { %v196_v55 = vmul.f32 %v287_v54, %v194_v53  ;;  %vm201_vm7 = vweird.f32 %v287_v54  ;;  %v289_v3 = vpop.eup %288 }
 0x1c1   :  { %vm202_vm9 = vmor %vm200_vm8, %vm201_vm7  ;;  %v215_v4 = vmul.f32 4.0, %v289_v3  ;;  %vm219_vm12 = vweird.f32 %v289_v3 }
 0x1c2   :  { %v197_v56 = vsub.f32 1.0, %v196_v55 }
 0x1c3   :  { %v216_v5 = vsub.f32 1.0, %v215_v4 }
 0x1c4   :  { %v198_v58 = vmul.f32 %v287_v54, %v197_v56 }
 0x1c5   :  { %v217_v6 = vmul.f32 %v289_v3, %v216_v5 }
 0x1c6   :  { %v199_v60 = vadd.f32 %v287_v54, %v198_v58 }
 0x1c7   :  { %v218_v7 = vadd.f32 %v289_v3, %v217_v6 }
 0x1c8   :  { %v203_v62 = vsel %vm202_vm9, %v287_v54, %v199_v60 }
 0x1c9   :  { %v208_v63 = vsel %vm205_vm11, %v207_v61, %v203_v62  ;;  %v220_v9 = vsel %vm219_vm12, %v289_v3, %v218_v7 }
 0x1ca   :  { %v211_v0 = vsel %vm210_vm10, %v208_v63, 0.0  ;;  %v222_v1 = vsel %vm210_vm10, %v208_v63, -inf }
 0x1cb   :  { %212 = vadd.xlane.f32.xlu2 %v211_v0 }
 0x1d3   :  { %223 = vmax.xlane.f32.xlu2 %v222_v1 }
 0x23e   :  { %v213_v8 = vpop.xlane.xlu2 %212 }
 0x23f   :  { %v221_v10 = vmul.f32 %v220_v9, %v213_v8 }
 0x241   :  { %v227_v14 = vmul.f32 %v226_v11, %v221_v10 }
 0x246   :  { %v224_v13 = vpop.xlane.xlu2 %223 }
 0x247   :  { %v230_v15 = vmul.f32 %v229_v12, %v224_v13 }
 0x249   :  { %v231_v16 = vadd.f32 %v230_v15, %v227_v14 }
 0x24b   :  { %v232_v17 = vsub.f32 0.0, %v231_v16 }
 0x24d   :  { %v233_v18 = vmul.f32 1.442695, %v232_v17 }
 0x24f   :  { %290 = vpow2.f32 %v233_v18 }
 0x255   :  { %v291_v19 = vpop.eup %290 }
 0x256   :  { %v235_v20 = vadd.f32 1.0, %v291_v19 }
 0x258   :  { %292 = vrcp.f32 %v235_v20  ;;  %v247_v24 = vand.u32 2147483648, %v235_v20  ;;  %v245_v26 = vand.u32 2147483647, %v235_v20  ;;  %vm241_vm14 = vweird.f32 %v235_v20 }
 0x25a   :  { %v248_v28 = vor.u32 1.1754944e-38, %v247_v24  ;;  %vm246_vm0 = vcmp.eq.f32.partialorder %v245_v26, 8.507059e+37 }
 0x25e   :  { %v293_v21 = vpop.eup %292 }
 0x25f   :  { %v237_v22 = vmul.f32 %v293_v21, %v235_v20  ;;  %vm242_vm13 = vweird.f32 %v293_v21 }
 0x260   :  { %vm243_vm15 = vmor %vm241_vm14, %vm242_vm13 }
 0x261   :  { %v238_v23 = vsub.f32 1.0, %v237_v22 }
 0x263   :  { %v239_v25 = vmul.f32 %v293_v21, %v238_v23 }
 0x265   :  { %v240_v27 = vadd.f32 %v293_v21, %v239_v25 }
 0x267   :  { %v244_v29 = vsel %vm243_vm15, %v293_v21, %v240_v27 }
 0x268   :  { %v249_v30 = vsel %vm246_vm0, %v248_v28, %v244_v29 }
 0x269   :  { %v251_v31 = vmul.f32 %v249_v30, %v208_v63 }
 0x26b   :  { %252 = vst.msk [vmem:[#allocation9] sm:$0x3] %vm210_vm10, %v251_v31 }
 0x26c   :  { %263 = dma.vmem_to_hbm [thread:$0]  %s259_s29, 32, %s261_s6, [#allocation6]  }
 0x26d   :  { %358 = dma.done.wait [#allocation6], 32  }
 0x26e   :  { %359 = vsyncadd [#allocation6], 4294967264 }
 0x26f   :  { %268 = vsyncpa [#allocation5], 1 }
 0x270   :  { %269 = vsyncpa [#allocation6], 1 }
 0x271   :  { %270 = vsyncpa [#allocation7], 1 }

</bundles_post_ra>
